<compile_context>
chip_gen: v5e
topology: v5e:2x2
jax: 0.10.0
libtpu: 0.0.40
codegen_flags: <defaults>
</compile_context>

<pallas_src>
import jax
import jax.numpy as jnp
from jax.experimental import pallas as pl
from jax.experimental.pallas import tpu as pltpu

LANE = 128     # lane width (last dim)
SUBLANE = 8    # sublane granularity (second-to-last dim)


def _round_up(x, m):
    return (x + m - 1) // m * m


def dqn_kernel(x_ref, w1_ref, b1_ref, w2_ref, b2_ref, w3_ref, b3_ref, o_ref):
    # bf16 MXU operands, f32 accumulation; bias-add + sigmoid in f32
    # (v5e VPU/EUP have no bf16 path, so f32 elementwise is safe everywhere).
    x = x_ref[...].astype(jnp.bfloat16)

    h1 = jnp.dot(x, w1_ref[...], preferred_element_type=jnp.float32)
    h1 = jax.nn.sigmoid(h1 + b1_ref[...])                 # EUP logistic

    h2 = jnp.dot(h1.astype(jnp.bfloat16), w2_ref[...],
                 preferred_element_type=jnp.float32)
    h2 = jax.nn.sigmoid(h2 + b2_ref[...])

    out = jnp.dot(h2.astype(jnp.bfloat16), w3_ref[...],
                  preferred_element_type=jnp.float32)
    o_ref[...] = (out + b3_ref[...]).astype(o_ref.dtype)


def init_params(key, n_states, n_actions):
    """Deterministic init; weights stored as [in, out] (transposed vs. PyTorch)."""
    ks = jax.random.split(key, 6)

    def lin(kw, kb, fan_in, fan_out):
        # mimic PyTorch's default uniform(-1/sqrt(fan_in), 1/sqrt(fan_in))
        bound = 1.0 / jnp.sqrt(fan_in)
        w = jax.random.uniform(kw, (fan_in, fan_out), jnp.float32, -bound, bound)
        b = jax.random.uniform(kb, (1, fan_out), jnp.float32, -bound, bound)
        return w, b

    w1, b1 = lin(ks[0], ks[1], n_states, 20)
    w2, b2 = lin(ks[2], ks[3], 20, 30)
    w3, b3 = lin(ks[4], ks[5], 30, n_actions)
    return {"w1": w1, "b1": b1, "w2": w2, "b2": b2, "w3": w3, "b3": b3}


def pad_params(p):
    """Pad only the tiny, VMEM-resident weights:
      w1: [nStates, 128]  (hidden 20 -> 128 cols, zeros)
      w2: [128, 128]      (zero rows 20.. so padded h1 lanes never contribute)
      w3: [128, nActions] (zero rows 30.. ; output kept at natural width)
      b1/b2: [1, 128], b3: [1, nActions]
    Zero padding keeps the result exact. Weights pre-cast to bf16 (MXU-native);
    biases stay f32. Do this once, outside the hot loop."""
    n_states = p["w1"].shape[0]
    n_actions = p["w3"].shape[1]
    H1, H2 = LANE, LANE

    def padw(w, rows, cols):
        out = jnp.zeros((rows, cols), jnp.float32)
        return out.at[:w.shape[0], :w.shape[1]].set(w).astype(jnp.bfloat16)

    def padb(b, cols):
        out = jnp.zeros((1, cols), jnp.float32)
        return out.at[:, :b.shape[-1]].set(b.reshape(1, -1))

    return {
        "w1": padw(p["w1"], n_states, H1), "b1": padb(p["b1"], H1),
        "w2": padw(p["w2"], H1, H2),       "b2": padb(p["b2"], H2),
        "w3": padw(p["w3"], H2, n_actions), "b3": padb(p["b3"], n_actions),
    }


def _pick_tb(batch, tb):
    """Batch tile: multiple of 8 sublanes; for large batches force grid >= 2
    so the 'parallel' axis can split across v7x's two TensorCores."""
    tb = max(SUBLANE, _round_up(tb, SUBLANE))
    b8 = _round_up(batch, SUBLANE)
    half = _round_up(pl.cdiv(b8, 2), SUBLANE)
    return max(SUBLANE, min(tb, half, b8))


def dqn_forward(x, padded_params, n_actions, *, tb=8192):
    """x: [B, nStates] float32. padded_params: output of pad_params()."""
    B, n_states = x.shape
    pp = padded_params
    H = pp["w1"].shape[1]          # padded hidden width (128)

    TB = _pick_tb(B, tb)
    grid = pl.cdiv(B, TB)          # ragged last tile: masked stores, no HBM pad

    const2d = lambda arr: pl.BlockSpec(arr.shape, lambda i: (0, 0))  # resident

    weight_bytes = sum(int(v.size) * v.dtype.itemsize for v in pp.values())
    cost = pl.CostEstimate(
        flops=int(2 * B * (n_states * 20 + 20 * 30 + 30 * n_actions)),
        transcendentals=int(B * 2 * H),
        bytes_accessed=int(x.size * 4 + B * n_actions * 4 + weight_bytes),
    )

    out = pl.pallas_call(
        dqn_kernel,
        out_shape=jax.ShapeDtypeStruct((B, n_actions), jnp.float32),
        grid=(grid,),
        in_specs=[
            # x at natural feature width: last block dim == full array dim.
            pl.BlockSpec((TB, n_states), lambda i: (i, 0)),
            const2d(pp["w1"]), const2d(pp["b1"]),
            const2d(pp["w2"]), const2d(pp["b2"]),
            const2d(pp["w3"]), const2d(pp["b3"]),
        ],
        # Output at natural width: far fewer HBM write bytes than a 128 pad.
        out_specs=pl.BlockSpec((TB, n_actions), lambda i: (i, 0)),
        compiler_params=pltpu.CompilerParams(
            dimension_semantics=("parallel",),   # megacore split on v7x
            vmem_limit_bytes=48 * 1024 * 1024,   # <= v7x 64 MiB physical
        ),
        cost_estimate=cost,
    )(x, pp["w1"], pp["b1"], pp["w2"], pp["b2"], pp["w3"], pp["b3"])

    return out


def dqn_reference(x, p):
    h1 = jax.nn.sigmoid(x @ p["w1"] + p["b1"])
    h2 = jax.nn.sigmoid(h1 @ p["w2"] + p["b2"])
    return h2 @ p["w3"] + p["b3"]


if __name__ == "__main__":
    key = jax.random.PRNGKey(0)
    k_param, k_x = jax.random.split(key)

    n_states, n_actions, batch = 16, 4, 8
    params = init_params(k_param, n_states, n_actions)
    padded = pad_params(params)
    x = jax.random.normal(k_x, (batch, n_states), jnp.float32)

    out = jax.block_until_ready(dqn_forward(x, padded, n_actions))
    ref = dqn_reference(x, params)

    assert out.shape == (batch, n_actions)
    # bf16 MXU operands with f32 accumulation -> relaxed tolerance.
    assert jnp.allclose(out, ref, atol=2e-2, rtol=2e-2)
    print("KERNEL_OK")
</pallas_src>

<mosaic_0001>
module attributes {stable_mosaic.version = 11 : i64} {
  func.func @dqn_kernel(%arg0: i32, %arg1: memref<8x16xf32, #tpu.memory_space<vmem>>, %arg2: memref<16x128xbf16, #tpu.memory_space<vmem>>, %arg3: memref<1x128xf32, #tpu.memory_space<vmem>>, %arg4: memref<128x128xbf16, #tpu.memory_space<vmem>>, %arg5: memref<1x128xf32, #tpu.memory_space<vmem>>, %arg6: memref<128x4xbf16, #tpu.memory_space<vmem>>, %arg7: memref<1x4xf32, #tpu.memory_space<vmem>>, %arg8: memref<8x4xf32, #tpu.memory_space<vmem>>) attributes {dimension_semantics = [#tpu.dimension_semantics<parallel>], iteration_bounds = array<i64: 1>, scalar_prefetch = 0 : i64, scratch_operands = 0 : i64, tpu.core_type = #tpu.core_type<tc>, window_params = [{transform_indices = @transform_0, window_bounds = array<i64: 8, 16>}, {pipeline_mode = #tpu.pipeline_mode<synchronous>, transform_indices = @transform_1, window_bounds = array<i64: 16, 128>}, {pipeline_mode = #tpu.pipeline_mode<synchronous>, transform_indices = @transform_2, window_bounds = array<i64: 1, 128>}, {pipeline_mode = #tpu.pipeline_mode<synchronous>, transform_indices = @transform_3, window_bounds = array<i64: 128, 128>}, {pipeline_mode = #tpu.pipeline_mode<synchronous>, transform_indices = @transform_4, window_bounds = array<i64: 1, 128>}, {pipeline_mode = #tpu.pipeline_mode<synchronous>, transform_indices = @transform_5, window_bounds = array<i64: 128, 4>}, {pipeline_mode = #tpu.pipeline_mode<synchronous>, transform_indices = @transform_6, window_bounds = array<i64: 1, 4>}, {transform_indices = @transform_7, window_bounds = array<i64: 8, 4>}]} {
    %c0 = arith.constant 0 : index
    %c0_0 = arith.constant 0 : index
    %0 = vector.load %arg1[%c0, %c0_0] : memref<8x16xf32, #tpu.memory_space<vmem>>, vector<8x16xf32>
    %1 = arith.truncf %0 : vector<8x16xf32> to vector<8x16xbf16>
    %c0_1 = arith.constant 0 : index
    %c0_2 = arith.constant 0 : index
    %2 = vector.load %arg2[%c0_1, %c0_2] : memref<16x128xbf16, #tpu.memory_space<vmem>>, vector<16x128xbf16>
    %cst = arith.constant dense<0.000000e+00> : vector<8x128xf32>
    %3 = tpu.matmul %1, %2, %cst {dimension_numbers = #tpu.dot_dimension_numbers<[1], [0], [0], [1], [0, 0, 1, 1], [], []>} : vector<8x16xbf16>, vector<16x128xbf16>, vector<8x128xf32> -> vector<8x128xf32>
    %c0_3 = arith.constant 0 : index
    %c0_4 = arith.constant 0 : index
    %4 = vector.load %arg3[%c0_3, %c0_4] : memref<1x128xf32, #tpu.memory_space<vmem>>, vector<1x128xf32>
    %5 = vector.broadcast %4 : vector<1x128xf32> to vector<8x128xf32>
    %6 = arith.addf %3, %5 : vector<8x128xf32>
    %7 = arith.negf %6 : vector<8x128xf32>
    %8 = math.exp %7 : vector<8x128xf32>
    %cst_5 = arith.constant 1.000000e+00 : f32
    %9 = vector.broadcast %cst_5 : f32 to vector<8x128xf32>
    %10 = arith.addf %9, %8 : vector<8x128xf32>
    %11 = arith.divf %9, %10 : vector<8x128xf32>
    %12 = arith.truncf %11 : vector<8x128xf32> to vector<8x128xbf16>
    %c0_6 = arith.constant 0 : index
    %c0_7 = arith.constant 0 : index
    %13 = vector.load %arg4[%c0_6, %c0_7] : memref<128x128xbf16, #tpu.memory_space<vmem>>, vector<128x128xbf16>
    %cst_8 = arith.constant dense<0.000000e+00> : vector<8x128xf32>
    %14 = tpu.matmul %12, %13, %cst_8 {dimension_numbers = #tpu.dot_dimension_numbers<[1], [0], [0], [1], [0, 0, 1, 1], [], []>} : vector<8x128xbf16>, vector<128x128xbf16>, vector<8x128xf32> -> vector<8x128xf32>
    %c0_9 = arith.constant 0 : index
    %c0_10 = arith.constant 0 : index
    %15 = vector.load %arg5[%c0_9, %c0_10] : memref<1x128xf32, #tpu.memory_space<vmem>>, vector<1x128xf32>
    %16 = vector.broadcast %15 : vector<1x128xf32> to vector<8x128xf32>
    %17 = arith.addf %14, %16 : vector<8x128xf32>
    %18 = arith.negf %17 : vector<8x128xf32>
    %19 = math.exp %18 : vector<8x128xf32>
    %cst_11 = arith.constant 1.000000e+00 : f32
    %20 = vector.broadcast %cst_11 : f32 to vector<8x128xf32>
    %21 = arith.addf %20, %19 : vector<8x128xf32>
    %22 = arith.divf %20, %21 : vector<8x128xf32>
    %23 = arith.truncf %22 : vector<8x128xf32> to vector<8x128xbf16>
    %c0_12 = arith.constant 0 : index
    %c0_13 = arith.constant 0 : index
    %24 = vector.load %arg6[%c0_12, %c0_13] : memref<128x4xbf16, #tpu.memory_space<vmem>>, vector<128x4xbf16>
    %cst_14 = arith.constant dense<0.000000e+00> : vector<8x4xf32>
    %25 = tpu.matmul %23, %24, %cst_14 {dimension_numbers = #tpu.dot_dimension_numbers<[1], [0], [0], [1], [0, 0, 1, 1], [], []>} : vector<8x128xbf16>, vector<128x4xbf16>, vector<8x4xf32> -> vector<8x4xf32>
    %c0_15 = arith.constant 0 : index
    %c0_16 = arith.constant 0 : index
    %26 = vector.load %arg7[%c0_15, %c0_16] : memref<1x4xf32, #tpu.memory_space<vmem>>, vector<1x4xf32>
    %27 = vector.broadcast %26 : vector<1x4xf32> to vector<8x4xf32>
    %28 = arith.addf %25, %27 : vector<8x4xf32>
    %c0_17 = arith.constant 0 : index
    %c0_18 = arith.constant 0 : index
    %29 = vector.load %arg8[%c0_17, %c0_18] : memref<8x4xf32, #tpu.memory_space<vmem>>, vector<8x4xf32>
    tpu.vector_store %arg8[%c0_17, %c0_18], %28 {strides = array<i32>} : memref<8x4xf32, #tpu.memory_space<vmem>>, vector<8x4xf32>,
    return
  }
  func.func @transform_0(%arg0: i32) -> (i32, i32) {
    %c0_i32 = arith.constant 0 : i32
    %c0_i32_0 = arith.constant 0 : i32
    return %arg0, %c0_i32 : i32, i32
  }
  func.func @transform_1(%arg0: i32) -> (i32, i32) {
    %c0_i32 = arith.constant 0 : i32
    %c0_i32_0 = arith.constant 0 : i32
    %c0_i32_1 = arith.constant 0 : i32
    return %c0_i32, %c0_i32_0 : i32, i32
  }
  func.func @transform_2(%arg0: i32) -> (i32, i32) {
    %c0_i32 = arith.constant 0 : i32
    %c0_i32_0 = arith.constant 0 : i32
    %c0_i32_1 = arith.constant 0 : i32
    return %c0_i32, %c0_i32_0 : i32, i32
  }
  func.func @transform_3(%arg0: i32) -> (i32, i32) {
    %c0_i32 = arith.constant 0 : i32
    %c0_i32_0 = arith.constant 0 : i32
    %c0_i32_1 = arith.constant 0 : i32
    return %c0_i32, %c0_i32_0 : i32, i32
  }
  func.func @transform_4(%arg0: i32) -> (i32, i32) {
    %c0_i32 = arith.constant 0 : i32
    %c0_i32_0 = arith.constant 0 : i32
    %c0_i32_1 = arith.constant 0 : i32
    return %c0_i32, %c0_i32_0 : i32, i32
  }
  func.func @transform_5(%arg0: i32) -> (i32, i32) {
    %c0_i32 = arith.constant 0 : i32
    %c0_i32_0 = arith.constant 0 : i32
    %c0_i32_1 = arith.constant 0 : i32
    return %c0_i32, %c0_i32_0 : i32, i32
  }
  func.func @transform_6(%arg0: i32) -> (i32, i32) {
    %c0_i32 = arith.constant 0 : i32
    %c0_i32_0 = arith.constant 0 : i32
    %c0_i32_1 = arith.constant 0 : i32
    return %c0_i32, %c0_i32_0 : i32, i32
  }
  func.func @transform_7(%arg0: i32) -> (i32, i32) {
    %c0_i32 = arith.constant 0 : i32
    %c0_i32_0 = arith.constant 0 : i32
    return %arg0, %c0_i32 : i32, i32
  }
}

</mosaic_0001>

<bundles_post_ra>
// kernel: tpu_custom_call.1
= control target key start
LH: loop header
LB: loop body
LE: loop exit
PB: predicated region body
PF: predicated region fallthrough
CT: control target
= control target key end

     0   :  { %12 = vsyncpa [#allocation3], 0  ;;  %s563_s0 = inlined_call_operand.hbm [shape: f32[8,16], index: 0, kind: input, shape index: {}]   ;;  %s564_s1 = inlined_call_operand.hbm [shape: bf16[16,128], index: 1, kind: input, shape index: {}]   ;;  %s565_s2 = inlined_call_operand.vmem [shape: f32[1,128], index: 2, kind: input, shape index: {}]   ;;  %s566_s3 = inlined_call_operand.vmem [shape: bf16[128,128], index: 3, kind: input, shape index: {}]   ;;  %s567_s4 = inlined_call_operand.vmem [shape: f32[1,128], index: 4, kind: input, shape index: {}]   ;;  %s568_s5 = inlined_call_operand.vmem [shape: bf16[128,4], index: 5, kind: input, shape index: {}]   ;;  %s569_s6 = inlined_call_operand.vmem [shape: f32[1,4], index: 6, kind: input, shape index: {}]   ;;  %s570_s7 = inlined_call_operand.vmem [shape: f32[8,4], index: 7, kind: output, shape index: {}]  }
   0x1   :  { %s19_s26 = sshll.u32 %s563_s0, 4  ;;  %s20_s26 = int_to_ptr.hbm [resolvable:$true] %s19_s26 }
   0x2   :  { %13 = vsyncpa [#allocation5], 0  ;;  %s453_s27 = smov [#allocation2]   ;;  %s29_s8 = sshll.u32 %s564_s1, 4  ;;  %s30_s8 = int_to_ptr.hbm [resolvable:$true] %s29_s8 }
   0x3   :  { %s21_s28 = sshll.u32 %s453_s27, 4  ;;  %s454_s9 = smov [#allocation4]   ;;  %s22_s28 = int_to_ptr.vmem [resolvable:$true] %s21_s28 }
   0x4   :  { %24 = dma.hbm_to_vmem [thread:$0]  %s20_s26, 128, %s22_s28, [#allocation3]  }
   0x5   :  { %s31_s10 = sshll.u32 %s454_s9, 4  ;;  %s455_s11 = smov 64   ;;  %s32_s10 = int_to_ptr.vmem [resolvable:$true] %s31_s10 }
   0x6   :  { %s456_s12 = smov 4  }
   0x7   :  { %37 = dma.hbm_to_vmem [thread:$0]  %s30_s8, 128, %s32_s10, [#allocation5], %s455_s11, %s455_s11, %s456_s12  }
   0x8   :  { %449 = dma.done.wait [#allocation3], 128  }
   0x9   :  { %450 = vsyncadd [#allocation3], 4294967168 }
   0xa   :  { %451 = dma.done.wait [#allocation5], 128  }
   0xb   :  { %452 = vsyncadd [#allocation5], 4294967168  ;;  %v369_v0 = vld [vmem:[#allocation4] sm:$0xff]  ;;  %v57_v1 = vld [vmem:[#allocation2] sm:$0xff]  ;;  %vm71_vm0 = vcmask 130048   ;;  %vm290_vm9 = vcmask 31744  }
   0xc   :  { %v58_v2 = vpack.c.bf16 %v57_v1, %v57_v1  ;;  %82 = vmatpush.bf16.msra.mxu0 %v369_v0  ;;  %v377_v3 = vld [vmem:[%s566_s3 + $0x38] sm:$0xff]  ;;  %v376_v4 = vld [vmem:[%s566_s3 + $0x30] sm:$0xff]  ;;  %v375_v5 = vld [vmem:[%s566_s3 + $0x28] sm:$0xff] }
   0xd   :  { %176 = vmatpush.bf16.msra.mxu1 %v377_v3  ;;  %v374_v6 = vld [vmem:[%s566_s3 + $0x20] sm:$0xff]  ;;  %v373_v7 = vld [vmem:[%s566_s3 + $0x18] sm:$0xff]  ;;  %v372_v8 = vld [vmem:[%s566_s3 + $0x10] sm:$0xff] }
   0xe   :  { %v371_v9 = vld [vmem:[%s566_s3 + $0x8] sm:$0xff]  ;;  %v370_v10 = vld [vmem:[%s566_s3] sm:$0xff]  ;;  %v385_v29 = vld [vmem:[%s568_s5 + $0x38] sm:$0xff] }
   0xf   :  { %302 = vmatmul.msk.bf16.vlgmr.msra.gmra.mxu0 %vm71_vm0, %v58_v2  ;;  %v390_v11 = vld [vmem:[%s565_s2] ss:$0 sm:$0xff]  ;;  %277 = vmatpush.bf16.msra.mxu2 %v385_v29  ;;  %v384_v30 = vld [vmem:[%s568_s5 + $0x30] sm:$0xff]  ;;  %v383_v31 = vld [vmem:[%s568_s5 + $0x28] sm:$0xff] }
  0x10   :  { %v382_v32 = vld [vmem:[%s568_s5 + $0x20] sm:$0xff]  ;;  %v381_v33 = vld [vmem:[%s568_s5 + $0x18] sm:$0xff]  ;;  %v380_v34 = vld [vmem:[%s568_s5 + $0x10] sm:$0xff] }
  0x11   :  { %177 = vmatpush.bf16.msra.mxu1 %v376_v4  ;;  %v379_v35 = vld [vmem:[%s568_s5 + $0x8] sm:$0xff]  ;;  %v378_v36 = vld [vmem:[%s568_s5] sm:$0xff] }
  0x12   :  { %v391_v37 = vld [vmem:[%s567_s4] ss:$0 sm:$0xff] }
  0x13   :  { %278 = vmatpush.bf16.msra.mxu2 %v384_v30  ;;  %v392_v55 = vld [vmem:[%s569_s6] ss:$0 sm:$0xff] }
  0x15   :  { %178 = vmatpush.bf16.msra.mxu1 %v375_v5 }
  0x17   :  { %279 = vmatpush.bf16.msra.mxu2 %v383_v31 }
  0x19   :  { %179 = vmatpush.bf16.msra.mxu1 %v374_v6 }
  0x1b   :  { %280 = vmatpush.bf16.msra.mxu2 %v382_v32 }
  0x1d   :  { %180 = vmatpush.bf16.msra.mxu1 %v373_v7 }
  0x1f   :  { %281 = vmatpush.bf16.msra.mxu2 %v381_v33 }
  0x21   :  { %181 = vmatpush.bf16.msra.mxu1 %v372_v8 }
  0x23   :  { %282 = vmatpush.bf16.msra.mxu2 %v380_v34 }
  0x25   :  { %182 = vmatpush.bf16.msra.mxu1 %v371_v9 }
  0x27   :  { %283 = vmatpush.bf16.msra.mxu2 %v379_v35 }
  0x29   :  { %183 = vmatpush.bf16.msra.mxu1 %v370_v10 }
  0x2b   :  { %284 = vmatpush.bf16.msra.mxu2 %v378_v36 }
  0x8c   :  { %v84_v12 = vpop.f32.mrf.mxu0 }
  0x8d   :  { %v85_v13 = vadd.f32 %v390_v11, %v84_v12 }
  0x8f   :  { %v303_v14 = vmul.f32 -1.442695, %v85_v13 }
  0x91   :  { %393 = vpow2.f32 %v303_v14 }
  0x94   :  { %v86_v15 = vpop.f32.mrf.mxu0 }
  0x97   :  { %v394_v16 = vpop.eup %393 }
  0x98   :  { %v91_v17 = vadd.f32 1.0, %v394_v16 }
  0x9a   :  { %395 = vrcp.f32 %v91_v17  ;;  %v103_v21 = vand.u32 2147483648, %v91_v17  ;;  %v101_v23 = vand.u32 2147483647, %v91_v17  ;;  %vm97_vm2 = vweird.f32 %v91_v17 }
  0x9c   :  { %v104_v25 = vor.u32 1.1754944e-38, %v103_v21  ;;  %vm102_vm4 = vcmp.eq.f32.partialorder %v101_v23, 8.507059e+37 }
  0xa0   :  { %v396_v18 = vpop.eup %395 }
  0xa1   :  { %v93_v19 = vmul.f32 %v396_v18, %v91_v17  ;;  %vm98_vm1 = vweird.f32 %v396_v18 }
  0xa2   :  { %vm99_vm3 = vmor %vm97_vm2, %vm98_vm1 }
  0xa3   :  { %v94_v20 = vsub.f32 1.0, %v93_v19 }
  0xa5   :  { %v95_v22 = vmul.f32 %v396_v18, %v94_v20 }
  0xa7   :  { %v96_v24 = vadd.f32 %v396_v18, %v95_v22 }
  0xa9   :  { %v100_v26 = vsel %vm99_vm3, %v396_v18, %v96_v24 }
  0xaa   :  { %v105_v27 = vsel %vm102_vm4, %v104_v25, %v100_v26 }
  0xab   :  { %v107_v28 = vpack.c.bf16 %v105_v27, %v105_v27 }
  0xad   :  { %184 = vmatmul.bf16.vlgmr.msra.gmra.mxu1 %v107_v28 }
 0x12a   :  { %v185_v38 = vpop.f32.mrf.mxu1 }
 0x12b   :  { %v186_v39 = vadd.f32 %v391_v37, %v185_v38 }
 0x12d   :  { %v336_v40 = vmul.f32 -1.442695, %v186_v39 }
 0x12f   :  { %397 = vpow2.f32 %v336_v40 }
 0x132   :  { %v187_v41 = vpop.f32.mrf.mxu1 }
 0x135   :  { %v398_v42 = vpop.eup %397 }
 0x136   :  { %v192_v43 = vadd.f32 1.0, %v398_v42 }
 0x138   :  { %399 = vrcp.f32 %v192_v43  ;;  %v204_v47 = vand.u32 2147483648, %v192_v43  ;;  %v202_v49 = vand.u32 2147483647, %v192_v43  ;;  %vm198_vm6 = vweird.f32 %v192_v43 }
 0x13a   :  { %v205_v51 = vor.u32 1.1754944e-38, %v204_v47  ;;  %vm203_vm8 = vcmp.eq.f32.partialorder %v202_v49, 8.507059e+37 }
 0x13e   :  { %v400_v44 = vpop.eup %399 }
 0x13f   :  { %v194_v45 = vmul.f32 %v400_v44, %v192_v43  ;;  %vm199_vm5 = vweird.f32 %v400_v44 }
 0x140   :  { %vm200_vm7 = vmor %vm198_vm6, %vm199_vm5 }
 0x141   :  { %v195_v46 = vsub.f32 1.0, %v194_v45 }
 0x143   :  { %v196_v48 = vmul.f32 %v400_v44, %v195_v46 }
 0x145   :  { %v197_v50 = vadd.f32 %v400_v44, %v196_v48 }
 0x147   :  { %v201_v52 = vsel %vm200_vm7, %v400_v44, %v197_v50 }
 0x148   :  { %v206_v53 = vsel %vm203_vm8, %v205_v51, %v201_v52 }
 0x149   :  { %v208_v54 = vpack.c.bf16 %v206_v53, %v206_v53 }
 0x14b   :  { %285 = vmatmul.bf16.vlgmr.msra.gmra.mxu2 %v208_v54 }
 0x1ce   :  { %v286_v56 = vpop.f32.mrf.mxu2 }
 0x1cf   :  { %v287_v57 = vadd.f32 %v392_v55, %v286_v56 }
 0x1d1   :  { %291 = vst.msk [vmem:[%s570_s7] sm:$0xff] %vm290_vm9, %v287_v57 }
 0x1d6   :  { %v288_v58 = vpop.f32.mrf.mxu2 }
 0x1d7   :  { %296 = vsyncpa [#allocation3], 1 }
 0x1d8   :  { %297 = vsyncpa [#allocation5], 1 }

</bundles_post_ra>
